<compile_context>
chip_gen: v5e
topology: v5e:2x2
jax: 0.10.0
libtpu: 0.0.40
codegen_flags: <defaults>
</compile_context>

<pallas_src>
import jax
import jax.numpy as jnp
from jax import lax
from jax.experimental import pallas as pl
from jax.experimental.pallas import tpu as pltpu


def _pick_tile(n, target=256):
    """Largest tile <= target that divides n, else n itself (full dim)."""
    for t in (target, 512, 256, 128, 64, 32, 16, 8):
        if t <= n and n % t == 0:
            return t
    return n


def _round_up(n, m):
    return ((n + m - 1) // m) * m


# ---------------------------------------------------------------------------
# Kernel 1: fused QKV projection.
#   x_ref : (TM, F)     w_ref : (F, 3*Hp)     b_ref : (1, 3*Hp) f32
#   q_ref / k_ref / v_ref : (TM, Hp)
# The 1/sqrt(H) scale is already folded into the Q columns of w_ref / b_ref.
# ---------------------------------------------------------------------------
def _qkv_proj_kernel(x_ref, w_ref, b_ref, q_ref, k_ref, v_ref):
    hp = q_ref.shape[-1]
    y = jnp.dot(x_ref[...], w_ref[...],
                preferred_element_type=jnp.float32) + b_ref[...]
    # 128-aligned lane-block slices (Hp is a multiple of 128) -> no lane shuffles.
    q_ref[...] = y[:, 0:hp].astype(q_ref.dtype)
    k_ref[...] = y[:, hp:2 * hp].astype(k_ref.dtype)
    v_ref[...] = y[:, 2 * hp:3 * hp].astype(v_ref.dtype)


# ---------------------------------------------------------------------------
# Kernel 2: flash attention (online softmax), grid = (B, S//TQ, S//TK).
#   q_ref : (TQ, Hp)   k_ref / v_ref : (TK, Hp)   o_ref : (TQ, Hp)
#   m_sc / l_sc : (TQ, 1) f32      acc_sc : (TQ, Hp) f32
# ---------------------------------------------------------------------------
def _flash_attn_kernel(q_ref, k_ref, v_ref, o_ref, m_sc, l_sc, acc_sc):
    ki = pl.program_id(2)

    @pl.when(ki == 0)
    def _init():
        m_sc[...] = jnp.full(m_sc.shape, -jnp.inf, dtype=m_sc.dtype)
        l_sc[...] = jnp.zeros(l_sc.shape, dtype=l_sc.dtype)
        acc_sc[...] = jnp.zeros(acc_sc.shape, dtype=acc_sc.dtype)

    # scores = q @ k^T, contracting axis 1 of both operands so k stays in its
    # natural layout (no XLU transpose). f32 accumulation on the MXU.
    s = lax.dot_general(q_ref[...], k_ref[...],
                        dimension_numbers=(((1,), (1,)), ((), ())),
                        preferred_element_type=jnp.float32)          # (TQ, TK)

    m_prev = m_sc[...]
    m_new = jnp.maximum(m_prev, jnp.max(s, axis=-1, keepdims=True))  # (TQ, 1)
    alpha = jnp.exp(m_prev - m_new)                                  # (TQ, 1)
    p = jnp.exp(s - m_new)                                           # (TQ, TK)

    l_sc[...] = alpha * l_sc[...] + jnp.sum(p, axis=-1, keepdims=True)
    acc_sc[...] = alpha * acc_sc[...] + jnp.dot(
        p.astype(v_ref.dtype), v_ref[...], preferred_element_type=jnp.float32)
    m_sc[...] = m_new

    @pl.when(ki == pl.num_programs(2) - 1)
    def _finalize():
        inv_l = pl.reciprocal(l_sc[...], approx=True)   # EUP, not a VALU divide
        o_ref[...] = (acc_sc[...] * inv_l).astype(o_ref.dtype)


def self_attention(x, wq, wk, wv, bq, bk, bv, *,
                   compute_dtype=jnp.float32,
                   proj_block=None, q_block=None, kv_block=None):
    """Self attention matching the PyTorch module.

    x: (B, S, F); wq/wk/wv: (F, H) (pre-transposed nn.Linear weights);
    bq/bk/bv: (1, H).  Returns (B, S, H) in x.dtype.

    compute_dtype: dtype of the MXU operands (bf16 recommended on v6e/v7x);
    accumulation and softmax statistics are always f32.
    """
    B, S, F = x.shape
    H = wq.shape[1]
    out_dtype = x.dtype

    # Pad the head width up to a lane-dense multiple of 128 so every matmul
    # N-dim and the output store are full-width (extra zero columns are exact).
    Hp = _round_up(H, 128)
    scale = 1.0 / (float(H) ** 0.5)        # PyTorch: / K.size(-1) ** 0.5

    # Fused (F, 3*Hp) QKV weight slab; 1/sqrt(H) folded into the Q columns.
    w_f = jnp.zeros((F, 3 * Hp), compute_dtype)
    w_f = w_f.at[:, 0:H].set((wq * scale).astype(compute_dtype))
    w_f = w_f.at[:, Hp:Hp + H].set(wk.astype(compute_dtype))
    w_f = w_f.at[:, 2 * Hp:2 * Hp + H].set(wv.astype(compute_dtype))

    b_f = jnp.zeros((1, 3 * Hp), jnp.float32)
    b_f = b_f.at[:, 0:H].set(jnp.reshape(bq * scale, (1, H)).astype(jnp.float32))
    b_f = b_f.at[:, Hp:Hp + H].set(jnp.reshape(bk, (1, H)).astype(jnp.float32))
    b_f = b_f.at[:, 2 * Hp:2 * Hp + H].set(jnp.reshape(bv, (1, H)).astype(jnp.float32))

    x_c = x.astype(compute_dtype)

    # ---- Kernel 1: fused QKV projection, grid (B, S//TM) -------------------
    TM = proj_block or _pick_tile(S)
    assert S % TM == 0 and (TM == S or TM % 8 == 0)

    qkv_out_spec = pl.BlockSpec((pl.Squeezed(), TM, Hp), lambda b, i: (b, i, 0))
    q, k, v = pl.pallas_call(
        _qkv_proj_kernel,
        out_shape=tuple(jax.ShapeDtypeStruct((B, S, Hp), compute_dtype)
                        for _ in range(3)),
        grid_spec=pltpu.PrefetchScalarGridSpec(
            num_scalar_prefetch=0,
            grid=(B, S // TM),
            in_specs=[
                pl.BlockSpec((pl.Squeezed(), TM, F), lambda b, i: (b, i, 0)),
                pl.BlockSpec((F, 3 * Hp), lambda b, i: (0, 0)),
                pl.BlockSpec((1, 3 * Hp), lambda b, i: (0, 0)),
            ],
            out_specs=[qkv_out_spec, qkv_out_spec, qkv_out_spec],
        ),
        compiler_params=pltpu.CompilerParams(
            dimension_semantics=("parallel", "parallel")),
    )(x_c, w_f, b_f)

    # ---- Kernel 2: flash attention, grid (B, S//TQ, S//TK) -----------------
    TQ = q_block or _pick_tile(S)
    TK = kv_block or _pick_tile(S)
    assert S % TQ == 0 and (TQ == S or TQ % 8 == 0)
    assert S % TK == 0 and (TK == S or TK % 8 == 0)

    out_p = pl.pallas_call(
        _flash_attn_kernel,
        out_shape=jax.ShapeDtypeStruct((B, S, Hp), out_dtype),
        grid_spec=pltpu.PrefetchScalarGridSpec(
            num_scalar_prefetch=0,
            grid=(B, S // TQ, S // TK),
            in_specs=[
                pl.BlockSpec((pl.Squeezed(), TQ, Hp), lambda b, qi, ki: (b, qi, 0)),
                pl.BlockSpec((pl.Squeezed(), TK, Hp), lambda b, qi, ki: (b, ki, 0)),
                pl.BlockSpec((pl.Squeezed(), TK, Hp), lambda b, qi, ki: (b, ki, 0)),
            ],
            out_specs=pl.BlockSpec((pl.Squeezed(), TQ, Hp),
                                   lambda b, qi, ki: (b, qi, 0)),
            scratch_shapes=[
                pltpu.VMEM((TQ, 1), jnp.float32),    # running row max
                pltpu.VMEM((TQ, 1), jnp.float32),    # running softmax denom
                pltpu.VMEM((TQ, Hp), jnp.float32),   # running numerator
            ],
        ),
        compiler_params=pltpu.CompilerParams(
            dimension_semantics=("parallel", "parallel", "arbitrary")),
    )(q, k, v)

    # Drop the zero-padded head columns (the in-kernel store stayed lane dense).
    return out_p[..., :H]


def reference(x, wq, wk, wv, bq, bk, bv):
    q = x @ wq + bq
    k = x @ wk + bk
    v = x @ wv + bv
    s = (q @ jnp.swapaxes(k, -2, -1)) / jnp.sqrt(jnp.float32(k.shape[-1]))
    p = jax.nn.softmax(s, axis=-1)
    return p @ v


if __name__ == "__main__":
    B, S, F, H = 2, 16, 32, 32   # batch, seq, in_features, hidden_dim

    key = jax.random.PRNGKey(0)
    kx, kq, kk, kv_, kbq, kbk, kbv = jax.random.split(key, 7)

    x = jax.random.normal(kx, (B, S, F), dtype=jnp.float32)
    # Deterministic parameters (shapes match nn.Linear(F, H), pre-transposed).
    wq = jax.random.normal(kq, (F, H), dtype=jnp.float32) * 0.1
    wk = jax.random.normal(kk, (F, H), dtype=jnp.float32) * 0.1
    wv = jax.random.normal(kv_, (F, H), dtype=jnp.float32) * 0.1
    bq = jax.random.normal(kbq, (1, H), dtype=jnp.float32) * 0.1
    bk = jax.random.normal(kbk, (1, H), dtype=jnp.float32) * 0.1
    bv = jax.random.normal(kbv, (1, H), dtype=jnp.float32) * 0.1

    ref = reference(x, wq, wk, wv, bq, bk, bv)

    # f32 operands; force 8-row tiles so the online-softmax accumulation across
    # multiple KV tiles is exercised even at this small S.
    out = self_attention(x, wq, wk, wv, bq, bk, bv,
                         compute_dtype=jnp.float32,
                         proj_block=8, q_block=8, kv_block=8)
    jax.block_until_ready(out)
    assert out.shape == (B, S, H)
    # Tolerance covers the approximate (EUP) reciprocal in the softmax normalize.
    assert jnp.allclose(out, ref, atol=1e-2, rtol=1e-2), "f32 path mismatch"

    # bf16 operands / f32 accumulation (recommended on v6e/v7x), default tiles.
    out_bf16 = self_attention(x, wq, wk, wv, bq, bk, bv,
                              compute_dtype=jnp.bfloat16)
    jax.block_until_ready(out_bf16)
    assert out_bf16.shape == (B, S, H)
    assert jnp.allclose(out_bf16, ref, atol=5e-2, rtol=5e-2), "bf16 path mismatch"

    print("KERNEL_OK")
</pallas_src>

<mosaic_0001>
module attributes {stable_mosaic.version = 11 : i64} {
  func.func @_qkv_proj_kernel(%arg0: i32, %arg1: i32, %arg2: memref<1x8x32xf32, #tpu.memory_space<vmem>>, %arg3: memref<32x384xf32, #tpu.memory_space<vmem>>, %arg4: memref<1x384xf32, #tpu.memory_space<vmem>>, %arg5: memref<1x8x128xf32, #tpu.memory_space<vmem>>, %arg6: memref<1x8x128xf32, #tpu.memory_space<vmem>>, %arg7: memref<1x8x128xf32, #tpu.memory_space<vmem>>) attributes {dimension_semantics = [#tpu.dimension_semantics<parallel>, #tpu.dimension_semantics<parallel>], iteration_bounds = array<i64: 2, 2>, scalar_prefetch = 0 : i64, scratch_operands = 0 : i64, tpu.core_type = #tpu.core_type<tc>, window_params = [{transform_indices = @transform_0, window_bounds = array<i64: 1, 8, 32>}, {pipeline_mode = #tpu.pipeline_mode<synchronous>, transform_indices = @transform_1, window_bounds = array<i64: 32, 384>}, {pipeline_mode = #tpu.pipeline_mode<synchronous>, transform_indices = @transform_2, window_bounds = array<i64: 1, 384>}, {transform_indices = @transform_3, window_bounds = array<i64: 1, 8, 128>}, {transform_indices = @transform_4, window_bounds = array<i64: 1, 8, 128>}, {transform_indices = @transform_5, window_bounds = array<i64: 1, 8, 128>}]} {
    %c0 = arith.constant 0 : index
    %c0_0 = arith.constant 0 : index
    %c0_1 = arith.constant 0 : index
    %0 = vector.load %arg2[%c0, %c0_0, %c0_1] : memref<1x8x32xf32, #tpu.memory_space<vmem>>, vector<1x8x32xf32>
    %1 = vector.shape_cast %0 : vector<1x8x32xf32> to vector<8x32xf32>
    %c0_2 = arith.constant 0 : index
    %c0_3 = arith.constant 0 : index
    %2 = vector.load %arg3[%c0_2, %c0_3] : memref<32x384xf32, #tpu.memory_space<vmem>>, vector<32x384xf32>
    %cst = arith.constant dense<0.000000e+00> : vector<8x384xf32>
    %3 = tpu.matmul %1, %2, %cst {dimension_numbers = #tpu.dot_dimension_numbers<[1], [0], [0], [1], [0, 0, 1, 1], [], []>} : vector<8x32xf32>, vector<32x384xf32>, vector<8x384xf32> -> vector<8x384xf32>
    %c0_4 = arith.constant 0 : index
    %c0_5 = arith.constant 0 : index
    %4 = vector.load %arg4[%c0_4, %c0_5] : memref<1x384xf32, #tpu.memory_space<vmem>>, vector<1x384xf32>
    %5 = vector.broadcast %4 : vector<1x384xf32> to vector<8x384xf32>
    %6 = arith.addf %3, %5 : vector<8x384xf32>
    %7 = vector.extract_strided_slice %6 {offsets = [0, 0], sizes = [8, 128], strides = [1, 1]} : vector<8x384xf32> to vector<8x128xf32>
    %c0_6 = arith.constant 0 : index
    %c0_7 = arith.constant 0 : index
    %c0_8 = arith.constant 0 : index
    %8 = vector.load %arg5[%c0_6, %c0_7, %c0_8] : memref<1x8x128xf32, #tpu.memory_space<vmem>>, vector<1x8x128xf32>
    %9 = vector.shape_cast %8 : vector<1x8x128xf32> to vector<8x128xf32>
    %10 = vector.shape_cast %7 : vector<8x128xf32> to vector<1x8x128xf32>
    tpu.vector_store %arg5[%c0_6, %c0_7, %c0_8], %10 {strides = array<i32>} : memref<1x8x128xf32, #tpu.memory_space<vmem>>, vector<1x8x128xf32>,
    %11 = vector.extract_strided_slice %6 {offsets = [0, 128], sizes = [8, 128], strides = [1, 1]} : vector<8x384xf32> to vector<8x128xf32>
    %c0_9 = arith.constant 0 : index
    %c0_10 = arith.constant 0 : index
    %c0_11 = arith.constant 0 : index
    %12 = vector.load %arg6[%c0_9, %c0_10, %c0_11] : memref<1x8x128xf32, #tpu.memory_space<vmem>>, vector<1x8x128xf32>
    %13 = vector.shape_cast %12 : vector<1x8x128xf32> to vector<8x128xf32>
    %14 = vector.shape_cast %11 : vector<8x128xf32> to vector<1x8x128xf32>
    tpu.vector_store %arg6[%c0_9, %c0_10, %c0_11], %14 {strides = array<i32>} : memref<1x8x128xf32, #tpu.memory_space<vmem>>, vector<1x8x128xf32>,
    %15 = vector.extract_strided_slice %6 {offsets = [0, 256], sizes = [8, 128], strides = [1, 1]} : vector<8x384xf32> to vector<8x128xf32>
    %c0_12 = arith.constant 0 : index
    %c0_13 = arith.constant 0 : index
    %c0_14 = arith.constant 0 : index
    %16 = vector.load %arg7[%c0_12, %c0_13, %c0_14] : memref<1x8x128xf32, #tpu.memory_space<vmem>>, vector<1x8x128xf32>
    %17 = vector.shape_cast %16 : vector<1x8x128xf32> to vector<8x128xf32>
    %18 = vector.shape_cast %15 : vector<8x128xf32> to vector<1x8x128xf32>
    tpu.vector_store %arg7[%c0_12, %c0_13, %c0_14], %18 {strides = array<i32>} : memref<1x8x128xf32, #tpu.memory_space<vmem>>, vector<1x8x128xf32>,
    return
  }
  func.func @transform_0(%arg0: i32, %arg1: i32) -> (i32, i32, i32) {
    %c0_i32 = arith.constant 0 : i32
    %c0_i32_0 = arith.constant 0 : i32
    return %arg0, %arg1, %c0_i32 : i32, i32, i32
  }
  func.func @transform_1(%arg0: i32, %arg1: i32) -> (i32, i32) {
    %c0_i32 = arith.constant 0 : i32
    %c0_i32_0 = arith.constant 0 : i32
    %c0_i32_1 = arith.constant 0 : i32
    return %c0_i32, %c0_i32_0 : i32, i32
  }
  func.func @transform_2(%arg0: i32, %arg1: i32) -> (i32, i32) {
    %c0_i32 = arith.constant 0 : i32
    %c0_i32_0 = arith.constant 0 : i32
    %c0_i32_1 = arith.constant 0 : i32
    return %c0_i32, %c0_i32_0 : i32, i32
  }
  func.func @transform_3(%arg0: i32, %arg1: i32) -> (i32, i32, i32) {
    %c0_i32 = arith.constant 0 : i32
    %c0_i32_0 = arith.constant 0 : i32
    return %arg0, %arg1, %c0_i32 : i32, i32, i32
  }
  func.func @transform_4(%arg0: i32, %arg1: i32) -> (i32, i32, i32) {
    %c0_i32 = arith.constant 0 : i32
    %c0_i32_0 = arith.constant 0 : i32
    return %arg0, %arg1, %c0_i32 : i32, i32, i32
  }
  func.func @transform_5(%arg0: i32, %arg1: i32) -> (i32, i32, i32) {
    %c0_i32 = arith.constant 0 : i32
    %c0_i32_0 = arith.constant 0 : i32
    return %arg0, %arg1, %c0_i32 : i32, i32, i32
  }
}

</mosaic_0001>

<bundles_post_ra>
// kernel: tpu_custom_call.1
= control target key start
LH: loop header
LB: loop body
LE: loop exit
PB: predicated region body
PF: predicated region fallthrough
CT: control target
= control target key end

     0   :  { %s1300_s0 = inlined_call_operand.hbm [shape: f32[2,16,32], index: 0, kind: input, shape index: {}]   ;;  %s1301_s1 = inlined_call_operand.hbm [shape: f32[32,384], index: 1, kind: input, shape index: {}]   ;;  %s1302_s2 = inlined_call_operand.hbm [shape: f32[1,384], index: 2, kind: input, shape index: {}]   ;;  %s1303_s3 = inlined_call_operand.hbm [shape: f32[2,16,128], index: 3, kind: output, shape index: {0}]   ;;  %s1304_s4 = inlined_call_operand.hbm [shape: f32[2,16,128], index: 4, kind: output, shape index: {1}]   ;;  %s1305_s5 = inlined_call_operand.hbm [shape: f32[2,16,128], index: 5, kind: output, shape index: {2}]  }
   0x1   :  { %1313 = sst [smem:[#allocation21_spill]] %s1301_s1 }
   0x2   :  { %1314 = sst [smem:[#allocation22_spill]] %s1302_s2 }
   0x3   :  { %11 = vsyncpa [#allocation3], 0 }
   0x4   :  { %13 = vsyncpa [#allocation3 + $0x1], 0 }
   0x5   :  { %14 = vsyncpa [#allocation6], 0 }
   0x6   :  { %15 = vsyncpa [#allocation4], 0 }
   0x7   :  { %17 = vsyncpa [#allocation4 + $0x1], 0 }
   0x8   :  { %18 = vsyncpa [#allocation10], 0 }
   0x9   :  { %20 = vsyncpa [#allocation10 + $0x1], 0  ;;  %s1061_s18 = smov 0   ;;  %s1063_s19 = smov 0  }
   0xa   :  { %s1065_s20 = smov 0   ;;  %s1067_s21 = smov 0  }
   0xb   :  { %s1069_s22 = smov 0   ;;  %s1071_s23 = smov 0  }
   0xc   :  { %s1073_s24 = smov 0   ;;  %s1075_s25 = smov 0  }
   0xd LB: > { %1315 = sst [smem:[#allocation16_spill]] %s997_s18  ;;  %s1102_s26 = sadd.s32 4294967295, %s1025_s25   ;;  %s1025_s25 = sphi %s1075_s25, %s26_s25   ;;  %s1021_s24 = sphi %s1073_s24, %s1340_s24   ;;  %s1017_s23 = sphi %s1071_s23, %s1339_s23   ;;  %s1013_s22 = sphi %s1069_s22, %s1338_s22   ;;  %s1009_s21 = sphi %s1067_s21, %s1337_s21   ;;  %s1005_s20 = sphi %s1065_s20, %s1336_s20   ;;  %s1001_s19 = sphi %s1063_s19, %s1335_s19   ;;  %s997_s18 = sphi %s1061_s18, %s1334_s18  }
   0xe   : > { %p634_p0 = scmp.ge.s32.totalorder %s1025_s25, 1  ;;  %p61_p1 = scmp.eq.s32.totalorder %s1102_s26, 0 }
   0xf   : > { %p197_p2 = scmp.lt.s32.totalorder %s1025_s25, 5  ;;  %s1316_s1 = sld [smem:[#allocation21_spill]] }
  0x10   : > { %s1027_s6 = smov [#allocation5]   ;;  %s1318_s2 = sld [smem:[#allocation22_spill]] }
  0x11   : > { %p1110_p3 = pnand %p634_p0, %p197_p2  ;;  %s210_s7 = sshll.u32 %s1027_s6, 4  ;;  %s211_s7 = int_to_ptr.vmem [resolvable:$true] %s210_s7 }
  0x12   : > { %s1028_s11 = smov 384   ;;  %s1029_s12 = smov 24  }
  0x13   : > { %p678_p4 = pneg %p1110_p3  ;;  %s1030_s13 = smov [#allocation7]  }
  0x14   : > { %s225_s14 = sshll.u32 %s1030_s13, 4  ;;  %s1309_s15 = sadd.s32 4294967294, %s1025_s25   ;;  %s226_s14 = int_to_ptr.vmem [resolvable:$true] %s225_s14 }
  0x15   : > { %s208_s29 = sshll.u32 %s1316_s1, 4  ;;  %p679_p5 = pnand %p678_p4, %p61_p1  ;;  %s209_s29 = int_to_ptr.hbm [resolvable:$true] %s208_s29 }
  0x16   : > { %s223_s10 = sshll.u32 %s1318_s2, 4  ;;  %s35_s16 = sadd.s32 1, %s1017_s23  ;;  %s224_s10 = int_to_ptr.hbm [resolvable:$true] %s223_s10 }
  0x17   : > { %681 = dma.hbm_to_vmem [thread:$0]  (!%p679_p5), %s209_s29, 1536, %s211_s7, [#allocation6], %s1028_s11, %s1028_s11, %s1029_s12  }
  0x18   : > { %684 = dma.hbm_to_vmem [thread:$0]  (!%p679_p5), %s224_s10, 48, %s226_s14, [#allocation6]  }
  0x19   : > { %p36_p6 = scmp.ge.s32.totalorder %s35_s16, 2  ;;  %s38_s17 = sadd.s32 1, %s1021_s24 }
  0x1a   : > { %s47_s27 = sadd.s32 1, %s1005_s20  ;;  %p54_p7 = scmp.ne.s32.totalorder %s1005_s20, %s1001_s19 }
  0x1b   : > { %s1342_s16 = smov (%p36_p6, %s35_s16), 0  ;;  %s1344_s17 = smov (!%p36_p6, %s38_s17), %s1021_s24 }
  0x1c   : > { %1319 = sst [smem:[#allocation17_spill]] %s1342_s16  ;;  %s43_s28 = ssub.s32 %s1017_s23, %s1342_s16 }
  0x1d   : > { %p55_p8 = scmp.eq.s32.totalorder %s1025_s25, 0  ;;  %p40_p9 = scmp.ge.s32.totalorder %s1344_s17, 2 }
  0x1e   : > { %p60_p10 = scmp.ne.s32.totalorder %s1001_s19, %s997_s18  ;;  %p128_p12 = scmp.eq.s32.totalorder %s1102_s26, 3 }
  0x1f   : > { %p1135_p11 = por %p55_p8, %p54_p7  ;;  %s1346_s17 = smov (%p40_p9, %s1344_s17), 0 }
  0x20   : > { %1321 = sst [smem:[#allocation18_spill]] %s1346_s17  ;;  %p1144_p13 = por %p61_p1, %p60_p10 }
  0x21   : > { %p1148_p0 = por %p128_p12, %p54_p7  ;;  %s42_s8 = ssub.s32 %s1021_s24, %s1346_s17 }
  0x22   : > { %p134_p2 = scmp.eq.s32.totalorder %s1309_s15, 3  ;;  %s44_s9 = sor.u32 %s43_s28, %s42_s8 }
  0x23   : > { %s1323_s7 = scalar_select %p1148_p0, 1, 0 }
  0x24   : > { %p701_p4 = scmp.lt.s32.totalorder %s1025_s25, 4  ;;  %p45_p5 = scmp.eq.s32.totalorder %s44_s9, 0 }
  0x25   : > { %1324 = sst [smem:[#allocation19_spill]] %s1323_s7  ;;  %p1157_p6 = por %p134_p2, %p60_p10 }
  0x26   : > { %s236_s11 = sand.u32 1, %s1005_s20   ;;  %s639_s12 = sshll.u32 %s1021_s24, 1 }
  0x27   : > { %s1164_s13 = scalar_select %p45_p5, %s1005_s20, %s47_s27  }
  0x28   : > { %s638_s14 = sshll.u32 %s236_s11, 3  ;;  %s244_s1 = sadd.s32 %s1017_s23, %s639_s12 }
  0x29   : > { %s640_s2 = sshll.u32 %s244_s1, 3  ;;  %s240_s16 = scalar_lea.vmem [#allocation2], %s638_s14 }
  0x2a   : > { %s250_s17 = sshll.u32 %s240_s16, 4  ;;  %s246_s7 = scalar_lea.hbm %s1300_s0, %s640_s2  ;;  %s251_s17 = int_to_ptr.vmem [resolvable:$true] %s250_s17 }
  0x2b   : > { %s248_s28 = sshll.u32 %s246_s7, 4  ;;  %p686_p7 = pnand %p701_p4, %p1135_p11  ;;  %s249_s28 = int_to_ptr.hbm [resolvable:$true] %s248_s28 }
  0x2c   : > { %s237_s8 = scalar_lea.sflag [#allocation3], %s236_s11  ;;  %259 = sbr.rel (%p1110_p3) target bundleno = 224 (0xe0), region = 32 }
  0x2d   : > { %688 = dma.hbm_to_vmem [thread:$0]  (!%p686_p7), %s249_s28, 128, %s251_s17, %s237_s8  }
  0x31   : > { %s1177_s1 = sand.u32 1, %s1001_s19  }
  0x32   : > { %s1180_s16 = sshll.u32 %s1177_s1, 3  ;;  %s262_s2 = scalar_lea.sflag [#allocation3], %s1177_s1 }
  0x33   : > { %s265_s18 = scalar_lea.vmem [#allocation2], %s1180_s16 }
  0x34   : > { %980 = dma.done.wait (%p1144_p13), %s262_s2, 128  }
  0x35   : > { %982 = vsyncadd (%p1144_p13), %s262_s2, 4294967168 }
  0x36   : > { %984 = dma.done.wait (%p61_p1), [#allocation6], 1584  }
  0x37   : > { %986 = vsyncadd (%p61_p1), [#allocation6], 4294965712  ;;  %v325_v0 = vld [vmem:[#allocation5 + $0x58] sm:$0xff]  ;;  %v322_v1 = vld [vmem:[#allocation5 + $0x40] sm:$0xff]  ;;  %vm334_vm0 = vcmask 261120   ;;  %s654_s30 = sshll.u32 %s1013_s22, 1 }
  0x38   : > { %390 = vmatpush.msra.mxu2 %v325_v0  ;;  %v324_v2 = vld [vmem:[#allocation5 + $0x50] sm:$0xff]  ;;  %v323_v3 = vld [vmem:[#allocation5 + $0x48] sm:$0xff]  ;;  %v321_v5 = vld [vmem:[#allocation5 + $0x38] sm:$0xff]  ;;  %s422_s15 = sadd.s32 %s1009_s21, %s654_s30  ;;  %s406_s27 = sand.u32 1, %s1102_s26  }
  0x39   : > { %v319_v4 = vld [vmem:[#allocation5 + $0x28] sm:$0xff]  ;;  %370 = vmatpush.msra.mxu1 %v324_v2  ;;  %350 = vmatpush.msra.mxu0 %v323_v3  ;;  %v320_v6 = vld [vmem:[#allocation5 + $0x30] sm:$0xff]  ;;  %v318_v7 = vld [vmem:[#allocation5 + $0x20] sm:$0xff]  ;;  %s655_s17 = sshll.u32 %s422_s15, 3  ;;  %s305_s14 = scalar_lea.vmem [#allocation9], %s1180_s16 }
  0x3a   : > { %391 = vmatpush.msra.mxu2 %v322_v1  ;;  %v317_v8 = vld [vmem:[#allocation5 + $0x18] sm:$0xff]  ;;  %v316_v9 = vld [vmem:[#allocation5 + $0x10] sm:$0xff]  ;;  %v315_v11 = vld [vmem:[#allocation5 + $0x8] sm:$0xff]  ;;  %s440_s7 = scalar_lea.hbm %s1304_s4, %s655_s17  ;;  %s424_s12 = scalar_lea.hbm %s1303_s3, %s655_s17 }
  0x3b   : > { %371 = vmatpush.msra.mxu1 %v321_v5  ;;  %351 = vmatpush.msra.mxu0 %v320_v6  ;;  %v313_v10 = vld [vmem:[%s265_s18] sm:$0xff]  ;;  %v314_v12 = vld [vmem:[#allocation5] sm:$0xff]  ;;  %s1202_s28 = sshll.u32 %s305_s14, 4  ;;  %s1204_s22 = sshll.u32 %s440_s7, 4  ;;  %s443_s28 = int_to_ptr.vmem [resolvable:$true] %s1202_s28  ;;  %s445_s22 = int_to_ptr.hbm [resolvable:$true] %s1204_s22 }
  0x3c   : > { %392 = vmatpush.msra.mxu2 %v319_v4  ;;  %v326_v13 = vld [vmem:[#allocation7] sm:$0x7]  ;;  %s298_s21 = scalar_lea.vmem [#allocation8], %s1180_s16  ;;  %s1209_s8 = sshll.u32 %s424_s12, 4  ;;  %s429_s8 = int_to_ptr.hbm [resolvable:$true] %s1209_s8 }
  0x3d   : > { %372 = vmatpush.msra.mxu1 %v318_v7  ;;  %352 = vmatpush.msra.mxu0 %v317_v8  ;;  %v329_v14 = vperm.slane %v326_v13, 1  ;;  %v328_v15 = vperm.slane %v326_v13, 0  ;;  %s1207_s26 = sshll.u32 %s298_s21, 4  ;;  %s456_s30 = scalar_lea.hbm %s1305_s5, %s655_s17  ;;  %v330_v20 = vperm.slane %v326_v13, 2 }
  0x3e   : > { %393 = vmatpush.msra.mxu2 %v316_v9  ;;  %1326 = sst [smem:[#allocation20_spill]] %s1207_s26  ;;  %s312_s29 = scalar_lea.vmem [#allocation11], %s1180_s16 }
  0x3f   : > { %650 = vmatmul.msk.f32.vlgmr.msra.gmra.mxu2 %vm334_vm0, %v313_v10  ;;  %373 = vmatpush.msra.mxu1 %v315_v11  ;;  %s1221_s6 = sshll.u32 %s312_s29, 4  ;;  %s1223_s7 = sshll.u32 %s456_s30, 4  ;;  %s459_s6 = int_to_ptr.vmem [resolvable:$true] %s1221_s6  ;;  %s461_s7 = int_to_ptr.hbm [resolvable:$true] %s1223_s7 }
  0x40   : > { %353 = vmatpush.msra.mxu0 %v314_v12  ;;  %649 = vmatmul.msk.f32.vlgmr.msra.gmra.mxu1 %vm334_vm0, %v313_v10  ;;  %s1225_s9 = scalar_lea.sflag [#allocation10], %s406_s27  ;;  %s877_s11 = sshra.s32 %s445_s22, 4  ;;  %s878_s11 = int_to_ptr.hbm [resolvable:$true] %s877_s11 }
  0x41   : > { %648 = vmatmul.msk.f32.vlgmr.msra.gmra.mxu0 %vm334_vm0, %v313_v10  ;;  %s879_s17 = scalar_lea.hbm %s878_s11, 8  ;;  %p884_p9 = scmp.lt.s32.totalorder %s878_s11, %s1304_s4 }
  0x42   : > { %p880_p1 = scmp.ne.s32.totalorder %s878_s11, %s879_s17 }
  0x44   : > { %p881_p3 = pnand %p880_p1, %p1148_p0 }
  0x46   : > { %p882_p8 = pneg %p881_p3 }
  0xbd   : > { %v375_v16 = vpop.f32.mrf.mxu1 }
  0xbe   : > { %v376_v17 = vadd.f32 %v375_v16, %v329_v14  ;;  %v355_v18 = vpop.f32.mrf.mxu0 }
  0xbf   : > { %v356_v19 = vadd.f32 %v355_v18, %v328_v15 }
  0xc0   : > { %399 = vst [vmem:[%s305_s14] sm:$0xff] %v376_v17  ;;  %s883_s14 = scalar_lea.hbm %s1304_s4, 32 }
  0xc1   : > { %398 = vst [vmem:[%s298_s21] sm:$0xff] %v356_v19  ;;  %p885_p10 = scmp.lt.s32.totalorder %s883_s14, %s879_s17 }
  0xc3   : > { %p886_p11 = por %p885_p10, %p884_p9 }
  0xc5   : > { %p887_p12 = pnand %p886_p11, %p882_p8 }
  0xc7   : > { %890 = shalt.err (!%p887_p12)
}
  0xc8   : > { %673 = dma.vmem_to_hbm [thread:$0]  (%p1148_p0), %s443_s28, 128, %s445_s22, %s1225_s9   ;;  %v395_v21 = vpop.f32.mrf.mxu2 }
  0xc9   : > { %s402_s27 = scalar_lea.sflag [#allocation4], %s1177_s1  ;;  %s905_s21 = sshra.s32 %s429_s8, 4  ;;  %s906_s21 = int_to_ptr.hbm [resolvable:$true] %s905_s21 }
  0xca   : > { %s907_s30 = scalar_lea.hbm %s906_s21, 8  ;;  %s911_s17 = scalar_lea.hbm %s1303_s3, 32 }
  0xcb   : > { %p908_p13 = scmp.ne.s32.totalorder %s906_s21, %s907_s30  ;;  %p912_p5 = scmp.lt.s32.totalorder %s906_s21, %s1303_s3 }
  0xcc   : > { %p913_p7 = scmp.lt.s32.totalorder %s911_s17, %s907_s30 }
  0xcd   : > { %p909_p2 = pnand %p908_p13, %p1148_p0 }
  0xce   : > { %p914_p1 = por %p913_p7, %p912_p5 }
  0xcf   : > { %p910_p4 = pneg %p909_p2 }
  0xd1   : > { %p915_p3 = pnand %p914_p1, %p910_p4 }
  0xd3   : > { %918 = shalt.err (!%p915_p3)
}
  0xd4   : > { %s1328_s1 = sld [smem:[#allocation20_spill]]  ;;  %v396_v22 = vadd.f32 %v395_v21, %v330_v20  ;;  %s933_s22 = sshra.s32 %s461_s7, 4  ;;  %s934_s22 = int_to_ptr.hbm [resolvable:$true] %s933_s22 }
  0xd5   : > { %s935_s14 = scalar_lea.hbm %s934_s22, 8  ;;  %s939_s30 = scalar_lea.hbm %s1305_s5, 32 }
  0xd6   : > { %400 = vst [vmem:[%s312_s29] sm:$0xff] %v396_v22  ;;  %p936_p8 = scmp.ne.s32.totalorder %s934_s22, %s935_s14  ;;  %p940_p11 = scmp.lt.s32.totalorder %s934_s22, %s1305_s5 }
  0xd7   : > { %p941_p12 = scmp.lt.s32.totalorder %s939_s30, %s935_s14 }
  0xd8   : > { %p937_p9 = pnand %p936_p8, %p1148_p0 }
  0xd9   : > { %p942_p13 = por %p941_p12, %p940_p11 }
  0xda   : > { %s1329_s28 = int_to_ptr.vmem [resolvable:$true] %s1328_s1  ;;  %p938_p10 = pneg %p937_p9 }
  0xdb   : > { %672 = dma.vmem_to_hbm [thread:$0]  (%p1148_p0), %s1329_s28, 128, %s429_s8, %s402_s27  }
  0xdc   : > { %p943_p2 = pnand %p942_p13, %p938_p10 }
  0xde   : > { %946 = shalt.err (!%p943_p2)
}
  0xdf   : > { %674 = dma.vmem_to_hbm [thread:$0]  (%p1148_p0), %s459_s6, 128, %s461_s7, %s1225_s9  }
  0xe0 PF: > { %s1330_s16 = sld [smem:[#allocation16_spill]]  ;;  %p704_p4 = scmp.ge.s32.totalorder %s1025_s25, 2 }
  0xe2   : > { %p690_p5 = pnand %p704_p4, %p1157_p6 }
  0xe4   : > { %p691_p7 = pneg %p690_p5 }
  0xe6   : > { %s472_s8 = sand.u32 1, %s1330_s16  }
  0xe7   : > { %s473_s29 = scalar_lea.sflag [#allocation4], %s472_s8 }
  0xe8   : > { %988 = dma.done.wait (%p691_p7), %s473_s29, 128  }
  0xe9   : > { %990 = vsyncadd (%p691_p7), %s473_s29, 4294967168  ;;  %s1331_s27 = sadd.s32 4294967294, %s1025_s25  }
  0xea   : > { %s482_s17 = sand.u32 1, %s1331_s27  }
  0xeb   : > { %s483_s12 = scalar_lea.sflag [#allocation10], %s482_s17 }
  0xec   : > { %992 = dma.done.wait (%p691_p7), %s483_s12, 256  }
  0xed   : > { %994 = vsyncadd (%p691_p7), %s483_s12, 4294967040  ;;  %s26_s25 = sadd.s32 1, %s1025_s25   ;;  %s1332_s10 = sld [smem:[#allocation17_spill]] }
  0xee   : > { %p23_p0 = scmp.ge.s32.totalorder %s26_s25, 6   ;;  %s1333_s15 = sld [smem:[#allocation18_spill]] }
  0xef   : > { %s1334_s18 = smov %s1001_s19  ;;  %s1335_s19 = smov %s1005_s20 }
  0xf0   : > { %s1336_s20 = smov %s1164_s13  ;;  %s1337_s21 = smov %s1017_s23 }
  0xf1   : > { %s1338_s22 = smov %s1021_s24  ;;  %25 = sbr.rel (!%p23_p0) target bundleno = 13 (0xd), region = 117 }
  0xf3   : > { %s1339_s23 = smov %s1332_s10 }
  0xf4   : > { %s1340_s24 = smov %s1333_s15 }
  0xf6   :  { %499 = vsyncpa [#allocation3], 1 }
  0xf7   :  { %501 = vsyncpa [#allocation3 + $0x1], 1 }
  0xf8   :  { %502 = vsyncpa [#allocation6], 1 }
  0xf9   :  { %503 = vsyncpa [#allocation4], 1 }
  0xfa   :  { %505 = vsyncpa [#allocation4 + $0x1], 1 }
  0xfb   :  { %506 = vsyncpa [#allocation10], 1 }
  0xfc   :  { %508 = vsyncpa [#allocation10 + $0x1], 1 }

</bundles_post_ra>
